<compile_context>
chip_gen: v7x
topology: tpu7x:2x2x1
jax: 0.10.0
libtpu: 0.0.40
codegen_flags: <defaults>
</compile_context>

<pallas_src>
import jax
import jax.numpy as jnp
from jax.experimental import pallas as pl
from jax.experimental.pallas import tpu as pltpu


_VMEM_LIMIT = 32 * 1024 * 1024      # explicit scoped-VMEM budget; safe on v5e/v6e/v7x


def _pick_tile(n, candidates):
    """Largest candidate that evenly divides n, else the full extent (legal block)."""
    for c in candidates:
        if c <= n and n % c == 0:
            return c
    return n


# ----------------------------------------------------------------------------
# Pallas kernels
# ----------------------------------------------------------------------------
def _linear_kernel(x_ref, w_ref, b_ref, o_ref):
    # one (1, TM, F) block:  o = x @ W + b    (f32 MXU, f32 accumulate)
    o_ref[0] = (jnp.dot(x_ref[0], w_ref[...],
                        preferred_element_type=jnp.float32) + b_ref[...])


def _gcn_sim_kernel(sim_ref, h_ref, bias_ref, prelu_ref, out_ref, acc_ref):
    # grid = (sims, row tiles, K tiles);  acc += sim[s, i, k] @ h[s][k]
    k = pl.program_id(2)
    tk = sim_ref.shape[2]

    @pl.when(k == 0)
    def _init():
        acc_ref[...] = jnp.zeros_like(acc_ref)

    row0 = pl.multiple_of(k * tk, tk)
    h_blk = h_ref[0, pl.ds(row0, tk), :].astype(sim_ref.dtype)   # bf16 for the MXU
    acc_ref[...] += jnp.dot(sim_ref[0], h_blk,
                            preferred_element_type=jnp.float32)

    @pl.when(k == pl.num_programs(2) - 1)
    def _finalize():
        out = acc_ref[...] + bias_ref[...]       # f32 epilogue (v5e-friendly)
        a = prelu_ref[0]                         # single-parameter PReLU (SMEM scalar)
        out_ref[0] = jnp.where(out >= 0.0, out, a * out)


# ----------------------------------------------------------------------------
# Pallas wrappers
# ----------------------------------------------------------------------------
def linear_slab(x, w, b, *, tm=None):
    """h[s] = x[s] @ w + b for a stacked slab x: [S, N, F] -> [S, N, O] (f32)."""
    S, N, F = x.shape
    O = w.shape[1]
    TM = tm or _pick_tile(N, (512, 256, 128, 64, 32, 16, 8))
    cost = pl.CostEstimate(flops=2 * S * N * F * O, transcendentals=0,
                           bytes_accessed=4 * (S * N * F + F * O + S * N * O))
    return pl.pallas_call(
        _linear_kernel,
        grid=(S, N // TM),
        out_shape=jax.ShapeDtypeStruct((S, N, O), jnp.float32),
        in_specs=[pl.BlockSpec((1, TM, F), lambda s, i: (s, i, 0)),
                  pl.BlockSpec((F, O), lambda s, i: (0, 0)),
                  pl.BlockSpec((1, O), lambda s, i: (0, 0))],
        out_specs=pl.BlockSpec((1, TM, O), lambda s, i: (s, i, 0)),
        compiler_params=pltpu.CompilerParams(
            dimension_semantics=("parallel", "parallel"),
            vmem_limit_bytes=_VMEM_LIMIT),
        cost_estimate=cost,
    )(x.astype(jnp.float32), w.astype(jnp.float32), b.astype(jnp.float32))


def gcn_sim_slab(sims, h, bias, prelu, *, tm=None, tk=None):
    """out[s] = PReLU(sims[s] @ h[s or 0] + bias)  -> [S, N, 64] (f32).

    sims: [S, N, N] (bfloat16), h: [1 or S, N, 64] (f32, kept VMEM-resident).
    """
    S, N, _ = sims.shape
    Sh, _, O = h.shape
    assert Sh in (1, S)
    TM = tm or _pick_tile(N, (512, 256, 128, 64, 32, 16, 8))
    TK = tk or _pick_tile(N, (1024, 512, 256, 128))
    h_map = (lambda s, i, k: (s, 0, 0)) if Sh == S else (lambda s, i, k: (0, 0, 0))
    cost = pl.CostEstimate(
        flops=2 * S * N * N * O, transcendentals=0,
        bytes_accessed=S * N * N * sims.dtype.itemsize + 4 * (Sh * N * O + S * N * O + O))
    return pl.pallas_call(
        _gcn_sim_kernel,
        grid=(S, N // TM, N // TK),
        out_shape=jax.ShapeDtypeStruct((S, N, O), jnp.float32),
        in_specs=[
            pl.BlockSpec((1, TM, TK), lambda s, i, k: (s, i, k)),   # sim tile (bf16)
            pl.BlockSpec((1, N, O), h_map),                         # h: resident per sim
            pl.BlockSpec((1, O), lambda s, i, k: (0, 0)),           # bias
            pl.BlockSpec(memory_space=pltpu.MemorySpace.SMEM),      # PReLU scalar
        ],
        out_specs=pl.BlockSpec((1, TM, O), lambda s, i, k: (s, i, 0)),
        scratch_shapes=[pltpu.VMEM((TM, O), jnp.float32)],
        compiler_params=pltpu.CompilerParams(
            dimension_semantics=("parallel", "parallel", "arbitrary"),
            vmem_limit_bytes=_VMEM_LIMIT),
        cost_estimate=cost,
    )(sims, h, bias, prelu)


# ----------------------------------------------------------------------------
# GCN_sim (fused over the three similarity matrices)
# ----------------------------------------------------------------------------
def prepare_gcn_params(gcn):
    # fold fc (Linear(fd, fd, bias=False)) and lin (Linear(fd, 64)):
    #   lin(fc(x)) = x @ (fc_W^T @ lin_W^T) + lin_b        (static param prep)
    w_comb = jnp.dot(gcn['fc_w'].T, gcn['lin_w'].T,
                     precision=jax.lax.Precision.HIGHEST)
    return {
        'w_comb': w_comb.astype(jnp.float32),
        'lin_b':  gcn['lin_b'].reshape(1, -1).astype(jnp.float32),
        'bias':   gcn['bias'].reshape(1, -1).astype(jnp.float32),
        'prelu':  gcn['prelu'].reshape(1).astype(jnp.float32),
    }


def gcn_layer(sims_bf16, x_slab, p, train, dropout_key=None):
    """Apply GCN_sim once per stacked similarity matrix.

    x_slab: [1, N, fd] (shared input, eval) or [S, N, fd] (one input per sim).
    Returns [S, N, 64].
    """
    if train:
        # nn.Dropout(0.3) on the GCN input (inverted dropout).
        # TODO(synk): dropout could move in-kernel via pltpu.prng_seed/prng_random_bits
        # to avoid materializing the masked copy in HBM.
        keep = 0.7
        mask = jax.random.bernoulli(dropout_key, keep, x_slab.shape)
        x_slab = jnp.where(mask, x_slab / keep, 0.0)
    h = linear_slab(x_slab, p['w_comb'], p['lin_b'])        # lin(fc(x)), computed once
    return gcn_sim_slab(sims_bf16, h, p['bias'], p['prelu'])


# ----------------------------------------------------------------------------
# PCA fit_transform (sklearn semantics): SVD fit in glue, projection in Pallas
# ----------------------------------------------------------------------------
def pca_fit_transform(X, n_components):
    mean = jnp.mean(X, axis=0, keepdims=True)
    Xc = X - mean
    # TODO(synk): SVD has no Pallas equivalent; the fit stays in jnp.linalg.svd (glue).
    U, S, Vt = jnp.linalg.svd(Xc, full_matrices=False)
    # sklearn svd_flip (u_based_decision): deterministic component signs
    idx = jnp.argmax(jnp.abs(U), axis=0)
    signs = jnp.sign(U[idx, jnp.arange(U.shape[1])])
    signs = jnp.where(signs == 0, 1.0, signs)
    comps = (Vt * signs[:, None])[:n_components]                  # (k, F)
    zero_b = jnp.zeros((1, n_components), jnp.float32)
    # transformed = U[:, :k] * S[:k] == Xc @ comps.T  (row-tiled Pallas matmul)
    return linear_slab(Xc[None], comps.T, zero_b)[0]


# ----------------------------------------------------------------------------
# di_embadding.forward
# ----------------------------------------------------------------------------
def di_embadding_forward(sim_set, emb, flag, params, key=None):
    p = prepare_gcn_params(params['gcn'])
    x = emb['disease'].astype(jnp.float32)
    N, fd = x.shape
    assert fd == 64, "GCN_sim is re-applied to its own 64-wide output => args.fd == 64"

    # the big N^2 operands: stack + cast to bf16 once, reused by both layers
    sims = jnp.stack([sim_set['disease_mut']['di_gua'],
                      sim_set['disease_mut']['di_cos'],
                      sim_set['disease_mut']['di_sem']], axis=0).astype(jnp.bfloat16)

    train = (flag == 'yes')
    if train:
        k1, k2 = jax.random.split(key)
        x1_in = jnp.broadcast_to(x[None], (3, N, fd))   # independent dropout per call
    else:
        k1 = k2 = None
        x1_in = x[None]                                  # shared h across the 3 sims

    L1 = gcn_layer(sims, x1_in, p, train, k1)            # [gua_1, cos_1, sem_1]
    L2 = gcn_layer(sims, L1, p, train, k2)               # [gua_2, cos_2, sem_2]

    # XM columns in the original torch.cat order: gua_1, gua_2, cos_1, cos_2, sem_1, sem_2
    XM = jnp.transpose(jnp.stack([L1, L2], axis=1), (2, 0, 1, 3)).reshape(N, 6 * 64)
    return pca_fit_transform(XM, 64).astype(jnp.float32)


# ----------------------------------------------------------------------------
# Deterministic parameter init (matches GCN_sim.__init__ + weights_init)
# ----------------------------------------------------------------------------
def _xavier_normal(key, out_f, in_f, gain=1.414):
    std = gain * (2.0 / (in_f + out_f)) ** 0.5
    return std * jax.random.normal(key, (out_f, in_f), dtype=jnp.float32)


def init_params(key, fd):
    k_fc, k_lin = jax.random.split(key, 2)
    gcn = {
        'fc_w':  _xavier_normal(k_fc, fd, fd),        # nn.Linear(fd, fd, bias=False)
        'lin_w': _xavier_normal(k_lin, 64, fd),       # nn.Linear(fd, 64)
        'lin_b': jnp.zeros((64,), jnp.float32),
        'bias':  jnp.zeros((64,), jnp.float32),       # GCN_sim.bias, filled with 0
        'prelu': jnp.array(0.25, jnp.float32),        # nn.PReLU default init
    }
    # lin1/lin2/di_fc1/di_fc2/cnn_di/lle exist in __init__ but are unused in forward().
    return {'gcn': gcn}


# pure-jnp reference for a single GCN_sim application (same bf16 casting)
def _gcn_ref(x, sim_bf16, p):
    h = jnp.dot(x, p['w_comb'], precision=jax.lax.Precision.HIGHEST) + p['lin_b']
    out = jnp.dot(sim_bf16, h.astype(jnp.bfloat16),
                  preferred_element_type=jnp.float32) + p['bias']
    a = p['prelu'][0]
    return jnp.where(out >= 0.0, out, a * out)


if __name__ == "__main__":
    # fd must equal 64 (GCN_sim output width) for the module's layer-2 re-application.
    fd = 64
    N = 384   # number of diseases: exercises multi-tile rows and K accumulation

    key = jax.random.PRNGKey(0)
    kp, ke, k1, k2, k3 = jax.random.split(key, 5)
    params = init_params(kp, fd)

    emb = {'disease': jax.random.normal(ke, (N, fd), dtype=jnp.float32)}
    sim_set = {'disease_mut': {
        'di_gua': jax.random.uniform(k1, (N, N), dtype=jnp.float32),
        'di_cos': jax.random.uniform(k2, (N, N), dtype=jnp.float32),
        'di_sem': jax.random.uniform(k3, (N, N), dtype=jnp.float32),
    }}

    out = di_embadding_forward(sim_set, emb, 'no', params)
    out = jax.block_until_ready(out)
    assert out.shape == (N, 64) and out.dtype == jnp.float32
    assert bool(jnp.all(jnp.isfinite(out)))

    # light numerical sanity check of the tiled/fused GCN path (eval mode)
    p = prepare_gcn_params(params['gcn'])
    sims_bf = jnp.stack([sim_set['disease_mut']['di_gua'],
                         sim_set['disease_mut']['di_cos'],
                         sim_set['disease_mut']['di_sem']], 0).astype(jnp.bfloat16)
    h1 = linear_slab(emb['disease'][None], p['w_comb'], p['lin_b'])
    L1 = gcn_sim_slab(sims_bf, h1, p['bias'], p['prelu'])
    L1_ref = jnp.stack([_gcn_ref(emb['disease'], sims_bf[s], p) for s in range(3)], 0)
    err = float(jnp.max(jnp.abs(L1 - L1_ref) / (jnp.abs(L1_ref) + 1.0)))
    assert err < 5e-2, f"GCN layer mismatch: {err}"

    print("KERNEL_OK")
</pallas_src>

<mosaic_0001>
module attributes {stable_mosaic.version = 11 : i64} {
  func.func @_linear_kernel(%arg0: i32, %arg1: i32, %arg2: memref<1x128x64xf32, #tpu.memory_space<vmem>>, %arg3: memref<64x64xf32, #tpu.memory_space<vmem>>, %arg4: memref<1x64xf32, #tpu.memory_space<vmem>>, %arg5: memref<1x128x64xf32, #tpu.memory_space<vmem>>) attributes {dimension_semantics = [#tpu.dimension_semantics<parallel>, #tpu.dimension_semantics<parallel>], iteration_bounds = array<i64: 1, 3>, scalar_prefetch = 0 : i64, scratch_operands = 0 : i64, tpu.core_type = #tpu.core_type<tc>, window_params = [{transform_indices = @transform_0, window_bounds = array<i64: 1, 128, 64>}, {pipeline_mode = #tpu.pipeline_mode<synchronous>, transform_indices = @transform_1, window_bounds = array<i64: 64, 64>}, {pipeline_mode = #tpu.pipeline_mode<synchronous>, transform_indices = @transform_2, window_bounds = array<i64: 1, 64>}, {transform_indices = @transform_3, window_bounds = array<i64: 1, 128, 64>}]} {
    %c0 = arith.constant 0 : index
    %c0_0 = arith.constant 0 : index
    %c0_1 = arith.constant 0 : index
    %0 = vector.load %arg2[%c0, %c0_0, %c0_1] : memref<1x128x64xf32, #tpu.memory_space<vmem>>, vector<1x128x64xf32>
    %1 = vector.shape_cast %0 : vector<1x128x64xf32> to vector<128x64xf32>
    %c0_2 = arith.constant 0 : index
    %c0_3 = arith.constant 0 : index
    %2 = vector.load %arg3[%c0_2, %c0_3] : memref<64x64xf32, #tpu.memory_space<vmem>>, vector<64x64xf32>
    %cst = arith.constant dense<0.000000e+00> : vector<128x64xf32>
    %3 = tpu.matmul %1, %2, %cst {dimension_numbers = #tpu.dot_dimension_numbers<[1], [0], [0], [1], [0, 0, 1, 1], [], []>} : vector<128x64xf32>, vector<64x64xf32>, vector<128x64xf32> -> vector<128x64xf32>
    %c0_4 = arith.constant 0 : index
    %c0_5 = arith.constant 0 : index
    %4 = vector.load %arg4[%c0_4, %c0_5] : memref<1x64xf32, #tpu.memory_space<vmem>>, vector<1x64xf32>
    %5 = vector.broadcast %4 : vector<1x64xf32> to vector<128x64xf32>
    %6 = arith.addf %3, %5 : vector<128x64xf32>
    %c0_6 = arith.constant 0 : index
    %c0_7 = arith.constant 0 : index
    %c0_8 = arith.constant 0 : index
    %7 = vector.load %arg5[%c0_6, %c0_7, %c0_8] : memref<1x128x64xf32, #tpu.memory_space<vmem>>, vector<1x128x64xf32>
    %8 = vector.shape_cast %7 : vector<1x128x64xf32> to vector<128x64xf32>
    %9 = vector.shape_cast %6 : vector<128x64xf32> to vector<1x128x64xf32>
    tpu.vector_store %arg5[%c0_6, %c0_7, %c0_8], %9 {strides = array<i32>} : memref<1x128x64xf32, #tpu.memory_space<vmem>>, vector<1x128x64xf32>,
    return
  }
  func.func @transform_0(%arg0: i32, %arg1: i32) -> (i32, i32, i32) {
    %c0_i32 = arith.constant 0 : i32
    %c0_i32_0 = arith.constant 0 : i32
    return %arg0, %arg1, %c0_i32 : i32, i32, i32
  }
  func.func @transform_1(%arg0: i32, %arg1: i32) -> (i32, i32) {
    %c0_i32 = arith.constant 0 : i32
    %c0_i32_0 = arith.constant 0 : i32
    %c0_i32_1 = arith.constant 0 : i32
    return %c0_i32, %c0_i32_0 : i32, i32
  }
  func.func @transform_2(%arg0: i32, %arg1: i32) -> (i32, i32) {
    %c0_i32 = arith.constant 0 : i32
    %c0_i32_0 = arith.constant 0 : i32
    %c0_i32_1 = arith.constant 0 : i32
    return %c0_i32, %c0_i32_0 : i32, i32
  }
  func.func @transform_3(%arg0: i32, %arg1: i32) -> (i32, i32, i32) {
    %c0_i32 = arith.constant 0 : i32
    %c0_i32_0 = arith.constant 0 : i32
    return %arg0, %arg1, %c0_i32 : i32, i32, i32
  }
}

</mosaic_0001>

<bundles_post_ra>
// kernel: tpu_custom_call.1
= control target key start
LH: loop header
LB: loop body
LE: loop exit
PB: predicated region body
PF: predicated region fallthrough
CT: control target
= control target key end

     0   :  { %s722_s12 = smov 0   ;;  %s724_s13 = smov 0   ;;  %s857_s0 = inlined_call_operand.vmem [shape: f32[1,384,64], index: 0, kind: input, shape index: {}]   ;;  %s858_s1 = inlined_call_operand.vmem [shape: f32[64,64], index: 1, kind: input, shape index: {}]   ;;  %s859_s2 = inlined_call_operand.vmem [shape: f32[1,64], index: 2, kind: input, shape index: {}]   ;;  %s860_s3 = inlined_call_operand.vmem [shape: f32[1,384,64], index: 3, kind: output, shape index: {}]  }
   0x1   :  { %s726_s14 = smov 0  }
   0x2 LB: > { %s22_s15 = sadd.s32 1, %s696_s13  ;;  %p542_p0 = scmp.ge.s32.totalorder %s700_s14, 1  ;;  %s700_s14 = sphi %s726_s14, %s13_s14   ;;  %s696_s13 = sphi %s724_s13, %s862_s13   ;;  %s692_s12 = sphi %s722_s12, %s861_s12  }
   0x3   : > { %p23_p1 = scmp.ge.s32.totalorder %s22_s15, 3  ;;  %p158_p2 = scmp.lt.s32.totalorder %s700_s14, 4 }
   0x5   : > { %s864_s15 = smov (%p23_p1, %s22_s15), 0  ;;  %p159_p3 = pnand %p542_p0, %p158_p2 }
   0x6   : > { %v226_v0 = vld [vmem:[%s858_s1] sm:$0xff] (!%p159_p3)  ;;  %v227_v1 = vld [vmem:[%s858_s1 + $0x8] sm:$0xff] (!%p159_p3)  ;;  %v228_v2 = vld [vmem:[%s858_s1 + $0x10] sm:$0xff] (!%p159_p3)  ;;  %s543_s22 = sshll.u32 (!%p159_p3), %s692_s12, 4  ;;  %vm241_vm0 = vcmask (!%p159_p3), 523264  }
   0x7   : > { %162 = sbr.rel (%p159_p3) target bundleno = 254 (0xfe), region = 32  ;;  %v630_v3 = vpack.c.bf16 (!%p159_p3), %v227_v1, %v226_v0  ;;  %v229_v4 = vld [vmem:[%s858_s1 + $0x18] sm:$0xff] (!%p159_p3)  ;;  %p193_p4 = scmp.lt.s32.totalorder (!%p159_p3), %s543_s22, 47  ;;  %v230_v6 = vld [vmem:[%s858_s1 + $0x20] sm:$0xff] (!%p159_p3)  ;;  %v231_v7 = vld [vmem:[%s858_s1 + $0x28] sm:$0xff] (!%p159_p3) }
   0x8   : > { %v634_v5 = vpack.c.bf16 (!%p159_p3), %v229_v4, %v228_v2  ;;  %v638_v8 = vpack.c.bf16 (!%p159_p3), %v231_v7, %v230_v6  ;;  %v232_v9 = vld [vmem:[%s858_s1 + $0x30] sm:$0xff] (!%p159_p3)  ;;  %v233_v10 = vld [vmem:[%s858_s1 + $0x38] sm:$0xff] (!%p159_p3)  ;;  %v547_v28 = vld [vmem:[%s859_s2] ss:$0 sm:$0xff] (!%p159_p3) }
   0x9   : > { %631 = vmatprep.subr.bf16.mxu0 (!%p159_p3), %v630_v3  ;;  %646 = vmatprep.subr.bf16.mxu1 (!%p159_p3), %v630_v3  ;;  %v642_v13 = vpack.c.bf16 (!%p159_p3), %v233_v10, %v232_v9 }
   0xa   : > { %633 = vmatpush3.bf16.msra.mxu0 (!%p159_p3), %v630_v3  ;;  %650 = vmatpush3.bf16.msra.mxu1 (!%p159_p3), %v630_v3 }
   0xb   : > { %635 = vmatprep.subr.bf16.mxu0 (!%p159_p3), %v634_v5  ;;  %647 = vmatprep.subr.bf16.mxu1 (!%p159_p3), %v634_v5 }
   0xe   : > { %s866_s22 = smov (!%p193_p4, %s543_s22), 47  ;;  %637 = vmatpush3.bf16.msra.mxu0 %v634_v5  ;;  %651 = vmatpush3.bf16.msra.mxu1 %v634_v5 }
   0xf   : > { %s544_s29 = sshll.u32 %s866_s22, 3  ;;  %639 = vmatprep.subr.bf16.mxu0 %v638_v8  ;;  %648 = vmatprep.subr.bf16.mxu1 %v638_v8 }
  0x10   : > { %s772_s9 = scalar_lea.vmem %s857_s0, %s544_s29  ;;  %s814_s17 = scalar_lea.vmem %s860_s3, %s544_s29 }
  0x11   : > { %v210_v11 = vld [vmem:[%s772_s9] sm:$0xff]  ;;  %v211_v14 = vld [vmem:[%s772_s9 + $0x8] sm:$0xff]  ;;  %v212_v16 = vld [vmem:[%s772_s9 + $0x10] sm:$0xff] }
  0x12   : > { %v218_v12 = vld [vmem:[%s772_s9 + $0x40] sm:$0xff]  ;;  %606 = vmatprep.mubr.msk.f32.mxu0 %vm241_vm0, %v210_v11  ;;  %641 = vmatpush3.bf16.msra.mxu0 %v638_v8  ;;  %v219_v15 = vld [vmem:[%s772_s9 + $0x48] sm:$0xff]  ;;  %v220_v17 = vld [vmem:[%s772_s9 + $0x50] sm:$0xff] }
  0x13   : > { %618 = vmatprep.mubr.msk.f32.mxu1 %vm241_vm0, %v218_v12  ;;  %652 = vmatpush3.bf16.msra.mxu1 %v638_v8  ;;  %v213_v18 = vld [vmem:[%s772_s9 + $0x18] sm:$0xff]  ;;  %v214_v20 = vld [vmem:[%s772_s9 + $0x20] sm:$0xff]  ;;  %v215_v22 = vld [vmem:[%s772_s9 + $0x28] sm:$0xff] }
  0x14   : > { %643 = vmatprep.subr.bf16.mxu0 %v642_v13  ;;  %649 = vmatprep.subr.bf16.mxu1 %v642_v13  ;;  %v221_v19 = vld [vmem:[%s772_s9 + $0x58] sm:$0xff]  ;;  %v222_v21 = vld [vmem:[%s772_s9 + $0x60] sm:$0xff]  ;;  %v223_v23 = vld [vmem:[%s772_s9 + $0x68] sm:$0xff] }
  0x15   : > { %v216_v24 = vld [vmem:[%s772_s9 + $0x30] sm:$0xff]  ;;  %v217_v26 = vld [vmem:[%s772_s9 + $0x38] sm:$0xff] }
  0x16   : > { %645 = vmatpush3.bf16.msra.mxu0 %v642_v13  ;;  %v224_v25 = vld [vmem:[%s772_s9 + $0x70] sm:$0xff]  ;;  %v225_v27 = vld [vmem:[%s772_s9 + $0x78] sm:$0xff] }
  0x17   : > { %653 = vmatpush3.bf16.msra.mxu1 %v642_v13 }
  0x19   : > { %607 = vmatmul.mubr.msk.f32.vlgmr.msra.gmra.mrb[0].mxu0 %vm241_vm0, %v211_v14 }
  0x1a   : > { %619 = vmatmul.mubr.msk.f32.vlgmr.msra.gmra.mrb[0].mxu1 %vm241_vm0, %v219_v15  ;;  %609 = vmatprep.mubr.msk.f32.mxu0 %vm241_vm0, %v212_v16 }
  0x1b   : > { %621 = vmatprep.mubr.msk.f32.mxu1 %vm241_vm0, %v220_v17 }
  0x1d   : > { %610 = vmatmul.mubr.msk.f32.gmra.mrb[2].mxu0 %vm241_vm0, %v213_v18 }
  0x1e   : > { %622 = vmatmul.mubr.msk.f32.gmra.mrb[2].mxu1 %vm241_vm0, %v221_v19  ;;  %612 = vmatprep.mubr.msk.f32.mxu0 %vm241_vm0, %v214_v20 }
  0x1f   : > { %624 = vmatprep.mubr.msk.f32.mxu1 %vm241_vm0, %v222_v21 }
  0x21   : > { %613 = vmatmul.mubr.msk.f32.gmra.mrb[4].mxu0 %vm241_vm0, %v215_v22 }
  0x22   : > { %625 = vmatmul.mubr.msk.f32.gmra.mrb[4].mxu1 %vm241_vm0, %v223_v23  ;;  %615 = vmatprep.mubr.msk.f32.mxu0 %vm241_vm0, %v216_v24 }
  0x23   : > { %627 = vmatprep.mubr.msk.f32.mxu1 %vm241_vm0, %v224_v25 }
  0x25   : > { %616 = vmatmul.mubr.msk.f32.gmra.mrb[6].mxu0 %vm241_vm0, %v217_v26 }
  0x26   : > { %628 = vmatmul.mubr.msk.f32.gmra.mrb[6].mxu1 %vm241_vm0, %v225_v27 }
  0xec   : > { %v608_v29 = vpop.f32.mrb[0].mxu0 }
  0xed   : > { %v620_v30 = vpop.f32.mrb[0].mxu1  ;;  %v362_v31 = vadd.f32 %v608_v29, %v547_v28  ;;  %v356_v33 = vpop.f32.mrb[1].mxu0 }
  0xee   : > { %v402_v32 = vadd.f32 %v620_v30, %v547_v28  ;;  %v396_v34 = vpop.f32.mrb[1].mxu1  ;;  %v357_v35 = vadd.f32 %v547_v28, %v356_v33 }
  0xef   : > { %v397_v36 = vadd.f32 %v547_v28, %v396_v34  ;;  %436 = vst.msk [vmem:[%s814_s17 + $0x8] sm:$0xff] %vm241_vm0, %v362_v31 }
  0xf0   : > { %444 = vst.msk [vmem:[%s814_s17 + $0x48] sm:$0xff] %vm241_vm0, %v402_v32  ;;  %435 = vst.msk [vmem:[%s814_s17] sm:$0xff] %vm241_vm0, %v357_v35  ;;  %v611_v37 = vpop.f32.mrb[2].mxu0 }
  0xf1   : > { %443 = vst.msk [vmem:[%s814_s17 + $0x40] sm:$0xff] %vm241_vm0, %v397_v36  ;;  %v623_v38 = vpop.f32.mrb[2].mxu1  ;;  %v372_v39 = vadd.f32 %v611_v37, %v547_v28  ;;  %v366_v41 = vpop.f32.mrb[3].mxu0 }
  0xf2   : > { %v412_v40 = vadd.f32 %v623_v38, %v547_v28  ;;  %v406_v42 = vpop.f32.mrb[3].mxu1  ;;  %v367_v43 = vadd.f32 %v547_v28, %v366_v41 }
  0xf3   : > { %v407_v44 = vadd.f32 %v547_v28, %v406_v42  ;;  %438 = vst.msk [vmem:[%s814_s17 + $0x18] sm:$0xff] %vm241_vm0, %v372_v39 }
  0xf4   : > { %446 = vst.msk [vmem:[%s814_s17 + $0x58] sm:$0xff] %vm241_vm0, %v412_v40  ;;  %437 = vst.msk [vmem:[%s814_s17 + $0x10] sm:$0xff] %vm241_vm0, %v367_v43  ;;  %v614_v45 = vpop.f32.mrb[4].mxu0 }
  0xf5   : > { %445 = vst.msk [vmem:[%s814_s17 + $0x50] sm:$0xff] %vm241_vm0, %v407_v44  ;;  %v626_v46 = vpop.f32.mrb[4].mxu1  ;;  %v382_v47 = vadd.f32 %v614_v45, %v547_v28  ;;  %v376_v49 = vpop.f32.mrb[5].mxu0 }
  0xf6   : > { %v422_v48 = vadd.f32 %v626_v46, %v547_v28  ;;  %v416_v50 = vpop.f32.mrb[5].mxu1  ;;  %v377_v51 = vadd.f32 %v547_v28, %v376_v49 }
  0xf7   : > { %v417_v52 = vadd.f32 %v547_v28, %v416_v50  ;;  %440 = vst.msk [vmem:[%s814_s17 + $0x28] sm:$0xff] %vm241_vm0, %v382_v47 }
  0xf8   : > { %448 = vst.msk [vmem:[%s814_s17 + $0x68] sm:$0xff] %vm241_vm0, %v422_v48  ;;  %439 = vst.msk [vmem:[%s814_s17 + $0x20] sm:$0xff] %vm241_vm0, %v377_v51  ;;  %v617_v53 = vpop.f32.mrb[6].mxu0 }
  0xf9   : > { %447 = vst.msk [vmem:[%s814_s17 + $0x60] sm:$0xff] %vm241_vm0, %v417_v52  ;;  %v629_v54 = vpop.f32.mrb[6].mxu1  ;;  %v392_v55 = vadd.f32 %v617_v53, %v547_v28  ;;  %v386_v57 = vpop.f32.mrb[7].mxu0 }
  0xfa   : > { %v432_v56 = vadd.f32 %v629_v54, %v547_v28  ;;  %v426_v58 = vpop.f32.mrb[7].mxu1  ;;  %v387_v59 = vadd.f32 %v547_v28, %v386_v57 }
  0xfb   : > { %v427_v60 = vadd.f32 %v547_v28, %v426_v58  ;;  %442 = vst.msk [vmem:[%s814_s17 + $0x38] sm:$0xff] %vm241_vm0, %v392_v55 }
  0xfc   : > { %450 = vst.msk [vmem:[%s814_s17 + $0x78] sm:$0xff] %vm241_vm0, %v432_v56  ;;  %441 = vst.msk [vmem:[%s814_s17 + $0x30] sm:$0xff] %vm241_vm0, %v387_v59 }
  0xfd   : > { %449 = vst.msk [vmem:[%s814_s17 + $0x70] sm:$0xff] %vm241_vm0, %v427_v60 }
  0xfe PF: > { %s13_s14 = sadd.s32 1, %s700_s14   ;;  %s861_s12 = smov %s696_s13 }
  0xff   : > { %p10_p5 = scmp.ge.s32.totalorder %s13_s14, 5   ;;  %s862_s13 = smov %s864_s15 }
 0x101   :  { %12 = sbr.rel (!%p10_p5) target bundleno = 2 (0x2), region = 62 }

</bundles_post_ra>
